<compile_context>
chip_gen: v7x
topology: tpu7x:2x2x1
jax: 0.10.0
libtpu: 0.0.40
codegen_flags: <defaults>
</compile_context>

<pallas_src>
import functools

import jax
import jax.numpy as jnp
from jax.experimental import pallas as pl
from jax.experimental.pallas import tpu as pltpu

NEG_SLOPE = 0.2     # PyG GATConv default negative_slope
NEG_BIG = -1e9      # "no edge" fill; exp() underflows to exactly 0
LANE = 128


def _round_up(v, m):
    return (v + m - 1) // m * m


def _vmem_estimate(tm, n_pad, c_pad):
    # double-buffered bf16 logits block + bf16 xp block + f32 output block,
    # plus one bf16 (tm, n_pad) temporary for the exp() result.
    return (2 * (tm * n_pad * 2 + n_pad * c_pad * 2 + tm * c_pad * 4)
            + tm * n_pad * 2)


def _vmem_capacity():
    try:
        return int(pltpu.get_tpu_info().vmem_capacity_bytes)
    except Exception:
        return 64 * 1024 * 1024      # safe on every generation (v7x = 64 MiB/TC)


def _pick_row_tile(n_pad, c_pad, budget):
    for tm in (1024, 512, 256, 128):
        if tm <= n_pad and n_pad % tm == 0 and _vmem_estimate(tm, n_pad, c_pad) <= budget:
            return tm
    # TODO(synk): for extremely large graphs (n_pad >~ 32K on v7x) even tm=128
    # can exceed per-core VMEM; a K grid axis with a two-pass accumulator would
    # be needed, but a dense O(N^2) formulation is impractical there anyway.
    return 128


# ----------------------------- Pallas kernel ------------------------------ #
def _dir_gat_kernel(logit_ref, xp_ref, out_ref):
    """One (direction*head, row-tile) step of the fused dense GATConv.

    logit_ref : (1, TM, N_pad)   bf16  leaky_relu'd attention logits with the
                per-row softmax statistics already folded in (log-space), so
                exp() directly yields the normalized attention weights.
    xp_ref    : (1, N_pad, C_pad) bf16  projected node features for this head.
    out_ref   : (TM, C_pad)       f32   aggregated output tile.
    """
    attn = jnp.exp(logit_ref[0])                     # bf16, EUP slot
    out_ref[...] = jnp.dot(attn, xp_ref[0],
                           preferred_element_type=jnp.float32)


# ------------------------------- glue ------------------------------------- #
def _build_dense_inputs(x, row, col, edge_attr, params, *, n_pad, c_pad):
    """Dense per-head inputs for one direction.

    row / col : receiving / sending node index of each edge for this direction.
    Returns:
      logits : (H, n_pad, n_pad) bf16 — leaky_relu'd logits with
               -(rowmax + log(denominator)) folded in; NEG_BIG where no edge.
      xp     : (H, n_pad, c_pad) bf16 — projected node features.
    """
    N = x.shape[0]
    H = params["att_src"].shape[0]
    C = params["att_src"].shape[2]
    D_e = edge_attr.shape[1]

    # Hoisted node projection: one lane-dense matmul covering all heads.
    xp = jnp.einsum("nf,fhc->hnc", x, params["w"])                       # (H,N,C)

    # Per-node attention scalars (PyG: att_src . x_j  +  att_dst . x_i).
    a_src = jnp.einsum("hnc,hc->hn", xp, params["att_src"][:, 0, :])     # sender
    a_dst = jnp.einsum("hnc,hc->hn", xp, params["att_dst"][:, 0, :])     # receiver

    # Per-edge attention term from edge features.
    e_alpha = jnp.einsum("ed,dhc,hc->he", edge_attr, params["w_edge"],
                         params["att_edge"][:, 0, :])                    # (H,E)

    # Self-loop edge attrs: fill_value='mean' => mean of incoming edge attrs.
    cnt = jnp.zeros((N,), jnp.float32).at[row].add(1.0)
    loop_attr = jnp.zeros((N, D_e), jnp.float32).at[row].add(edge_attr)
    loop_attr = loop_attr / jnp.maximum(cnt, 1.0)[:, None]
    l_alpha = jnp.einsum("nd,dhc,hc->hn", loop_attr, params["w_edge"],
                         params["att_edge"][:, 0, :])                    # (H,N)

    # leaky_relu hoisted out of the kernel: O(H*E) here vs O(H*N^2) in-kernel.
    edge_logit = a_dst[:, row] + a_src[:, col] + e_alpha                 # (H,E)
    loop_logit = a_dst + a_src + l_alpha                                 # (H,N)
    edge_logit = jnp.where(edge_logit >= 0.0, edge_logit, NEG_SLOPE * edge_logit)
    loop_logit = jnp.where(loop_logit >= 0.0, loop_logit, NEG_SLOPE * loop_logit)

    # Sparse softmax row statistics (exact: non-edge entries underflow exp to 0).
    m = jnp.full((H, N), -jnp.inf, jnp.float32).at[:, row].max(edge_logit)
    m = jnp.maximum(m, loop_logit)                                       # self loops
    denom = jnp.zeros((H, N), jnp.float32).at[:, row].add(
        jnp.exp(edge_logit - m[:, row]))
    denom = denom + jnp.exp(loop_logit - m)
    offset = -(m + jnp.log(denom))                                       # (H,N)

    # Scatter straight into a padded bf16 dense matrix (no f32 intermediate,
    # no separate pad/cast pass).  Diagonal is written last so the 'mean'
    # self-loop fill overrides any original self-loop edge (PyG's
    # remove_self_loops + add_self_loops).
    # TODO(synk): duplicate (src, dst) multi-edges collapse under this dense
    # adjacency form (PyG softmaxes each parallel edge separately).
    edge_vals = (edge_logit + offset[:, row]).astype(jnp.bfloat16)
    loop_vals = (loop_logit + offset).astype(jnp.bfloat16)
    idx = jnp.arange(N)
    logits = jnp.full((H, n_pad, n_pad), NEG_BIG, jnp.bfloat16)
    logits = logits.at[:, row, col].set(edge_vals)
    logits = logits.at[:, idx, idx].set(loop_vals)

    xp = jnp.pad(xp, ((0, 0), (0, n_pad - N), (0, c_pad - C))).astype(jnp.bfloat16)
    return logits, xp


def dir_gat_conv(x, edge_index, edge_attr, params_s2d, params_d2s, alpha):
    """DirGATConv forward: (1-alpha)*GATConv(edge_index) + alpha*GATConv(edge_index^T)."""
    N = x.shape[0]
    H = params_s2d["att_src"].shape[0]
    C = params_s2d["att_src"].shape[2]

    n_pad = _round_up(N, LANE)
    c_pad = _round_up(C, LANE)
    cap = _vmem_capacity()
    tm = _pick_row_tile(n_pad, c_pad, int(cap * 0.7))

    src, dst = edge_index[0], edge_index[1]
    # Direction 0: messages flow src -> dst.  Direction 1: transposed edges.
    rows = jnp.stack([dst, src])          # receiving node per edge, per direction
    cols = jnp.stack([src, dst])          # sending node per edge, per direction
    params = jax.tree_util.tree_map(lambda a, b: jnp.stack([a, b]),
                                    params_s2d, params_d2s)

    build = functools.partial(_build_dense_inputs, n_pad=n_pad, c_pad=c_pad)
    logits, xp = jax.vmap(build, in_axes=(None, 0, 0, None, 0))(
        x, rows, cols, edge_attr, params)
    # Built stacked; merging the leading (2, H) axes is a copy-free reshape.
    logits = logits.reshape(2 * H, n_pad, n_pad)        # (2H, n_pad, n_pad) bf16
    xp = xp.reshape(2 * H, n_pad, c_pad)                # (2H, n_pad, c_pad) bf16

    est = _vmem_estimate(tm, n_pad, c_pad)
    vmem_limit = int(min(cap - (4 << 20), max(est + (8 << 20), 32 << 20)))

    out = pl.pallas_call(
        _dir_gat_kernel,
        out_shape=jax.ShapeDtypeStruct((n_pad, 2 * H * c_pad), jnp.float32),
        grid=(2 * H, n_pad // tm),
        in_specs=[
            pl.BlockSpec((1, tm, n_pad), lambda g, i: (g, i, 0)),      # logits
            pl.BlockSpec((1, n_pad, c_pad), lambda g, i: (g, 0, 0)),   # xp (once per g)
        ],
        out_specs=pl.BlockSpec((tm, c_pad), lambda g, i: (i, g)),
        compiler_params=pltpu.CompilerParams(
            dimension_semantics=("parallel", "parallel"),
            vmem_limit_bytes=vmem_limit,
        ),
    )(logits, xp)

    # Lane-dense output: columns ordered (direction, head, c_pad); slice padding.
    out = out.reshape(n_pad, 2, H, c_pad)[:N, :, :, :C]               # (N,2,H,C)
    out0 = out[:, 0].reshape(N, H * C) + params_s2d["bias"][None, :]
    out1 = out[:, 1].reshape(N, H * C) + params_d2s["bias"][None, :]
    # TODO(synk): the alpha blend / bias add could be fused into the kernel via
    # an innermost 'arbitrary' direction axis, at the cost of re-fetching xp
    # per row tile; kept in XLA since the output stream is comparatively small.
    return (1.0 - alpha) * out0 + alpha * out1


def init_gat_params(key, in_dim, out_dim, heads, edge_dim):
    ks = jax.random.split(key, 6)
    f32 = jnp.float32
    return {
        "w":        0.1 * jax.random.normal(ks[0], (in_dim, heads, out_dim), f32),
        "att_src":  0.1 * jax.random.normal(ks[1], (heads, 1, out_dim), f32),
        "att_dst":  0.1 * jax.random.normal(ks[2], (heads, 1, out_dim), f32),
        "w_edge":   0.1 * jax.random.normal(ks[3], (edge_dim, heads, out_dim), f32),
        "att_edge": 0.1 * jax.random.normal(ks[4], (heads, 1, out_dim), f32),
        "bias":     0.01 * jax.random.normal(ks[5], (heads * out_dim,), f32),
    }


if __name__ == "__main__":
    N, F, C, H, E_DIM = 16, 8, 8, 2, 4
    ALPHA = 0.25

    key = jax.random.PRNGKey(0)
    k_x, k_e, k_p1, k_p2 = jax.random.split(key, 4)

    x = jax.random.normal(k_x, (N, F), jnp.float32)

    # Deterministic graph: 3 unique outgoing edges per node, no self loops,
    # no duplicate (src, dst) pairs.
    base = jnp.arange(N, dtype=jnp.int32)
    src = jnp.concatenate([base, base, base])
    dst = jnp.concatenate([(base + 1) % N, (base + 3) % N, (base + 5) % N])
    edge_index = jnp.stack([src, dst], axis=0)                     # (2, 48)
    edge_attr = jax.random.normal(k_e, (edge_index.shape[1], E_DIM), jnp.float32)

    params_s2d = init_gat_params(k_p1, F, C, H, E_DIM)
    params_d2s = init_gat_params(k_p2, F, C, H, E_DIM)

    fwd = jax.jit(functools.partial(dir_gat_conv, alpha=ALPHA))
    out = jax.block_until_ready(fwd(x, edge_index, edge_attr, params_s2d, params_d2s))

    assert out.shape == (N, H * C), out.shape
    assert bool(jnp.all(jnp.isfinite(out)))
    # TODO(synk): GATConv attention dropout (p=0.0 default / eval mode) is a
    # no-op here and is not implemented.
    print("KERNEL_OK")
</pallas_src>

<mosaic_0001>
module attributes {stable_mosaic.version = 11 : i64} {
  func.func private @main(%arg0: i32) attributes {dimension_semantics = [#tpu.dimension_semantics<core_parallel>], iteration_bounds = array<i64: 2>, tpu.core_type = #tpu.core_type<sc_scalar_subcore>, window_params = []} {
    return
  }
}

module attributes {stable_mosaic.version = 11 : i64} {
  func.func private @main(%arg0: i32) attributes {dimension_semantics = [#tpu.dimension_semantics<core_parallel>], iteration_bounds = array<i64: 2>, tpu.core_type = #tpu.core_type<sc_scalar_subcore>, window_params = []} {
    return
  }
}

module attributes {stable_mosaic.version = 11 : i64} {
  func.func @_dir_gat_kernel(%arg0: i32, %arg1: i32, %arg2: memref<1x128x128xbf16, #tpu.memory_space<vmem>>, %arg3: memref<1x128x128xbf16, #tpu.memory_space<vmem>>, %arg4: memref<128x128xf32, #tpu.memory_space<vmem>>) attributes {dimension_semantics = [#tpu.dimension_semantics<parallel>, #tpu.dimension_semantics<parallel>], iteration_bounds = array<i64: 4, 1>, scalar_prefetch = 0 : i64, scratch_operands = 0 : i64, tpu.core_type = #tpu.core_type<tc>, window_params = [{transform_indices = @transform_0, window_bounds = array<i64: 1, 128, 128>}, {transform_indices = @transform_1, window_bounds = array<i64: 1, 128, 128>}, {transform_indices = @transform_2, window_bounds = array<i64: 128, 128>}]} {
    %c0 = arith.constant 0 : index
    %c0_0 = arith.constant 0 : index
    %c0_1 = arith.constant 0 : index
    %0 = vector.load %arg2[%c0, %c0_0, %c0_1] : memref<1x128x128xbf16, #tpu.memory_space<vmem>>, vector<1x128x128xbf16>
    %1 = vector.shape_cast %0 : vector<1x128x128xbf16> to vector<128x128xbf16>
    %2 = math.exp %1 : vector<128x128xbf16>
    %c0_2 = arith.constant 0 : index
    %c0_3 = arith.constant 0 : index
    %c0_4 = arith.constant 0 : index
    %3 = vector.load %arg3[%c0_2, %c0_3, %c0_4] : memref<1x128x128xbf16, #tpu.memory_space<vmem>>, vector<1x128x128xbf16>
    %4 = vector.shape_cast %3 : vector<1x128x128xbf16> to vector<128x128xbf16>
    %cst = arith.constant dense<0.000000e+00> : vector<128x128xf32>
    %5 = tpu.matmul %2, %4, %cst {dimension_numbers = #tpu.dot_dimension_numbers<[1], [0], [0], [1], [0, 0, 1, 1], [], []>} : vector<128x128xbf16>, vector<128x128xbf16>, vector<128x128xf32> -> vector<128x128xf32>
    %c0_5 = arith.constant 0 : index
    %c0_6 = arith.constant 0 : index
    %6 = vector.load %arg4[%c0_5, %c0_6] : memref<128x128xf32, #tpu.memory_space<vmem>>, vector<128x128xf32>
    tpu.vector_store %arg4[%c0_5, %c0_6], %5 {strides = array<i32>} : memref<128x128xf32, #tpu.memory_space<vmem>>, vector<128x128xf32>,
    return
  }
  func.func @transform_0(%arg0: i32, %arg1: i32) -> (i32, i32, i32) {
    %c0_i32 = arith.constant 0 : i32
    %c0_i32_0 = arith.constant 0 : i32
    return %arg0, %arg1, %c0_i32 : i32, i32, i32
  }
  func.func @transform_1(%arg0: i32, %arg1: i32) -> (i32, i32, i32) {
    %c0_i32 = arith.constant 0 : i32
    %c0_i32_0 = arith.constant 0 : i32
    %c0_i32_1 = arith.constant 0 : i32
    return %arg0, %c0_i32, %c0_i32_0 : i32, i32, i32
  }
  func.func @transform_2(%arg0: i32, %arg1: i32) -> (i32, i32) {
    %c0_i32 = arith.constant 0 : i32
    return %arg1, %arg0 : i32, i32
  }
}

</mosaic_0001>

<bundles_post_ra>
// kernel: dir_gat_conv.1
= control target key start
LH: loop header
LB: loop body
LE: loop exit
PB: predicated region body
PF: predicated region fallthrough
CT: control target
= control target key end

     0   :  { %s893_s9 = smov 0   ;;  %s895_s10 = smov 0   ;;  %s1028_s0 = inlined_call_operand.vmem [shape: bf16[4,128,128], index: 0, kind: input, shape index: {}]   ;;  %s1029_s1 = inlined_call_operand.vmem [shape: bf16[4,128,128], index: 1, kind: input, shape index: {}]   ;;  %s1030_s2 = inlined_call_operand.vmem [shape: f32[128,512], index: 2, kind: output, shape index: {}]  }
   0x1   :  { %s897_s11 = smov 0   ;;  %s899_s12 = smov 0  }
   0x2   :  { %s901_s13 = smov 0  }
   0x3 LB: > { %s662_s14 = sadd.s32 4294967295, %s876_s13   ;;  %s24_s15 = sadd.s32 1, %s872_s12  ;;  %s876_s13 = sphi %s901_s13, %s12_s13   ;;  %s872_s12 = sphi %s899_s12, %s1035_s12   ;;  %s868_s11 = sphi %s897_s11, %s1034_s11   ;;  %s864_s10 = sphi %s895_s10, %s1033_s10   ;;  %s860_s9 = sphi %s893_s9, %s1032_s9  }
   0x4   : > { %p26_p0 = scmp.ge.s32.totalorder %s24_s15, 4  ;;  %s87_s16 = sadd.s32 1, %s864_s10 }
   0x5   : > { %p97_p1 = scmp.ne.s32.totalorder %s864_s10, %s860_s9  ;;  %p98_p2 = scmp.eq.s32.totalorder %s662_s14, 3 }
   0x6   : > { %s1037_s15 = smov (%p26_p0, %s24_s15), 0  ;;  %p666_p4 = scmp.ge.s32.totalorder %s876_s13, 1 }
   0x7   : > { %p925_p3 = por %p98_p2, %p97_p1  ;;  %s83_s18 = ssub.s32 %s872_s12, %s1037_s15 }
   0x8   : > { %p143_p5 = scmp.lt.s32.totalorder %s876_s13, 5  ;;  %p85_p6 = scmp.eq.s32.totalorder %s83_s18, 0 }
   0xa   : > { %p144_p7 = pnand %p666_p4, %p143_p5 }
   0xb   : > { %s934_s19 = scalar_select %p85_p6, %s864_s10, %s87_s16  }
   0xc   : > { %147 = sbr.rel (%p144_p7) target bundleno = 289 (0x121), region = 28  ;;  %p174_p8 = scmp.lt.s32.totalorder (!%p144_p7), %s868_s11, 3 }
   0xd   : > { %s170_s28 = sand.u32 (!%p144_p7), 1, %s860_s9  }
   0xe   : > { %s667_s29 = sshll.u32 (!%p144_p7), %s170_s28, 7 }
   0xf   : > { %s973_s30 = scalar_lea.vmem (!%p144_p7), [#allocation2], %s667_s29 }
  0x13   : > { %s175_s20 = scalar_select %p174_p8, %s868_s11, 3 }
  0x14   : > { %s689_s3 = sshll.u32 (%p925_p3), %s868_s11, 3 }
  0x15   : > { %s692_s21 = sshll.u32 %s175_s20, 6  ;;  %s490_s6 = scalar_lea.vmem (%p925_p3), %s1030_s2, %s689_s3 }
  0x16   : > { %s941_s24 = scalar_lea.vmem %s1029_s1, %s692_s21  ;;  %s949_s27 = scalar_lea.vmem %s1028_s0, %s692_s21 }
  0x17   : > { %v798_v0 = vld [vmem:[%s941_s24] sm:$0xff]   ;;  %v799_v1 = vld [vmem:[%s941_s24 + $0x8] sm:$0xff]   ;;  %v800_v2 = vld [vmem:[%s941_s24 + $0x10] sm:$0xff]  }
  0x18   : > { %710 = vmatprep.subr.bf16.mxu0 %v798_v0  ;;  %742 = vmatprep.subr.bf16.mxu1 %v798_v0  ;;  %v801_v3 = vld [vmem:[%s941_s24 + $0x18] sm:$0xff]   ;;  %v190_v4 = vld [vmem:[%s949_s27] sm:$0xf]  ;;  %v191_v5 = vld [vmem:[%s949_s27 + $0x4] sm:$0xf] }
  0x19   : > { %711 = vmatpush3.bf16.msra.mxu0 %v798_v0  ;;  %750 = vmatpush3.bf16.msra.mxu1 %v798_v0  ;;  %v198_v6 = vld [vmem:[%s949_s27 + $0x20] sm:$0xf]  ;;  %v207_v7 = vmul.bf16 1069105081, %v190_v4  ;;  %v210_v8 = vmul.bf16 1069105081, %v191_v5 }
  0x1a   : > { %712 = vmatprep.subr.bf16.mxu0 %v799_v1  ;;  %743 = vmatprep.subr.bf16.mxu1 %v799_v1  ;;  %v199_v9 = vld [vmem:[%s949_s27 + $0x24] sm:$0xf]  ;;  %v231_v10 = vmul.bf16 1069105081, %v198_v6  ;;  %v192_v12 = vld [vmem:[%s949_s27 + $0x8] sm:$0xf] }
  0x1b   : > { %v234_v11 = vmul.bf16 1069105081, %v199_v9  ;;  %806 = vpow.bf16 %v207_v7  ;;  %v193_v13 = vld [vmem:[%s949_s27 + $0xc] sm:$0xf]  ;;  %v213_v14 = vmul.bf16 1069105081, %v192_v12 }
  0x1c   : > { %v200_v15 = vld [vmem:[%s949_s27 + $0x28] sm:$0xf]  ;;  %v802_v16 = vld [vmem:[%s941_s24 + $0x20] sm:$0xff]   ;;  %808 = vpow.bf16 %v210_v8  ;;  %v216_v17 = vmul.bf16 1069105081, %v193_v13  ;;  %v804_v35 = vld [vmem:[%s941_s24 + $0x30] sm:$0xff]  }
  0x1d   : > { %713 = vmatpush3.bf16.msra.mxu0 %v799_v1  ;;  %751 = vmatpush3.bf16.msra.mxu1 %v799_v1  ;;  %v201_v18 = vld [vmem:[%s949_s27 + $0x2c] sm:$0xf]  ;;  %810 = vpow.bf16 %v231_v10  ;;  %v237_v19 = vmul.bf16 1069105081, %v200_v15  ;;  %v194_v20 = vld [vmem:[%s949_s27 + $0x10] sm:$0xf] }
  0x1e   : > { %714 = vmatprep.subr.bf16.mxu0 %v800_v2  ;;  %744 = vmatprep.subr.bf16.mxu1 %v800_v2  ;;  %v195_v21 = vld [vmem:[%s949_s27 + $0x14] sm:$0xf]  ;;  %812 = vpow.bf16 %v234_v11  ;;  %v240_v22 = vmul.bf16 1069105081, %v201_v18  ;;  %v202_v23 = vld [vmem:[%s949_s27 + $0x30] sm:$0xf] }
  0x1f   : > { %814 = vpow.bf16 %v213_v14  ;;  %v219_v24 = vmul.bf16 1069105081, %v194_v20  ;;  %v203_v25 = vld [vmem:[%s949_s27 + $0x34] sm:$0xf]  ;;  %v803_v26 = vld [vmem:[%s941_s24 + $0x28] sm:$0xff]   ;;  %v805_v42 = vld [vmem:[%s941_s24 + $0x38] sm:$0xff]  }
  0x20   : > { %816 = vpow.bf16 %v216_v17  ;;  %v222_v27 = vmul.bf16 1069105081, %v195_v21  ;;  %v196_v28 = vld [vmem:[%s949_s27 + $0x18] sm:$0xf]  ;;  %v243_v29 = vmul.bf16 1069105081, %v202_v23 }
  0x21   : > { %715 = vmatpush3.bf16.msra.mxu0 %v800_v2  ;;  %752 = vmatpush3.bf16.msra.mxu1 %v800_v2  ;;  %818 = vpow.bf16 %v237_v19  ;;  %v197_v30 = vld [vmem:[%s949_s27 + $0x1c] sm:$0xf]  ;;  %v246_v31 = vmul.bf16 1069105081, %v203_v25  ;;  %v204_v32 = vld [vmem:[%s949_s27 + $0x38] sm:$0xf] }
  0x22   : > { %716 = vmatprep.subr.bf16.mxu0 %v801_v3  ;;  %745 = vmatprep.subr.bf16.mxu1 %v801_v3  ;;  %820 = vpow.bf16 %v240_v22  ;;  %v225_v33 = vmul.bf16 1069105081, %v196_v28  ;;  %v205_v34 = vld [vmem:[%s949_s27 + $0x3c] sm:$0xf]  ;;  %v228_v36 = vmul.bf16 1069105081, %v197_v30 }
  0x23   : > { %822 = vpow.bf16 %v219_v24  ;;  %v249_v37 = vmul.bf16 1069105081, %v204_v32  ;;  %v252_v39 = vmul.bf16 1069105081, %v205_v34 }
  0x24   : > { %824 = vpow.bf16 %v222_v27 }
  0x25   : > { %717 = vmatpush3.bf16.msra.mxu0 %v801_v3  ;;  %753 = vmatpush3.bf16.msra.mxu1 %v801_v3  ;;  %826 = vpow.bf16 %v243_v29 }
  0x26   : > { %718 = vmatprep.subr.bf16.mxu0 %v802_v16  ;;  %746 = vmatprep.subr.bf16.mxu1 %v802_v16  ;;  %v807_v38 = vpop.eup %806  ;;  %828 = vpow.bf16 %v246_v31 }
  0x27   : > { %v809_v40 = vpop.eup %808  ;;  %830 = vpow.bf16 %v225_v33 }
  0x28   : > { %v811_v41 = vpop.eup %810  ;;  %v672_v43 = vcombine.low %v807_v38, %v809_v40  ;;  %832 = vpow.bf16 %v228_v36 }
  0x29   : > { %719 = vmatpush3.bf16.msra.mxu0 %v802_v16  ;;  %754 = vmatpush3.bf16.msra.mxu1 %v802_v16  ;;  %v813_v44 = vpop.eup %812  ;;  %834 = vpow.bf16 %v249_v37 }
  0x2a   : > { %720 = vmatprep.subr.bf16.mxu0 %v803_v26  ;;  %747 = vmatprep.subr.bf16.mxu1 %v803_v26  ;;  %v815_v45 = vpop.eup %814  ;;  %v676_v46 = vcombine.low %v811_v41, %v813_v44  ;;  %836 = vpow.bf16 %v252_v39 }
  0x2b   : > { %726 = vmatprep.mubr.bf16.mxu0 %v672_v43  ;;  %v817_v47 = vpop.eup %816 }
  0x2c   : > { %v819_v48 = vpop.eup %818  ;;  %734 = vmatprep.mubr.bf16.mxu1 %v676_v46  ;;  %v673_v51 = vcombine.low %v815_v45, %v817_v47 }
  0x2d   : > { %721 = vmatpush3.bf16.msra.mxu0 %v803_v26  ;;  %755 = vmatpush3.bf16.msra.mxu1 %v803_v26  ;;  %v821_v49 = vpop.eup %820 }
  0x2e   : > { %722 = vmatprep.subr.bf16.mxu0 %v804_v35  ;;  %748 = vmatprep.subr.bf16.mxu1 %v804_v35  ;;  %v823_v50 = vpop.eup %822  ;;  %v677_v52 = vcombine.low %v819_v48, %v821_v49 }
  0x2f   : > { %v825_v53 = vpop.eup %824 }
  0x30   : > { %v827_v54 = vpop.eup %826  ;;  %v674_v55 = vcombine.low %v823_v50, %v825_v53 }
  0x31   : > { %723 = vmatpush3.bf16.msra.mxu0 %v804_v35  ;;  %756 = vmatpush3.bf16.msra.mxu1 %v804_v35  ;;  %v829_v56 = vpop.eup %828 }
  0x32   : > { %724 = vmatprep.subr.bf16.mxu0 %v805_v42  ;;  %749 = vmatprep.subr.bf16.mxu1 %v805_v42  ;;  %v831_v57 = vpop.eup %830  ;;  %v678_v58 = vcombine.low %v827_v54, %v829_v56 }
  0x33   : > { %v833_v59 = vpop.eup %832 }
  0x34   : > { %v835_v60 = vpop.eup %834  ;;  %v675_v62 = vcombine.low %v831_v57, %v833_v59 }
  0x35   : > { %725 = vmatpush3.bf16.msra.mxu0 %v805_v42  ;;  %757 = vmatpush3.bf16.msra.mxu1 %v805_v42  ;;  %v837_v61 = vpop.eup %836 }
  0x36   : > { %v679_v63 = vcombine.low %v835_v60, %v837_v61 }
  0x38   : > { %727 = vmatmul.mubr.bf16.vlgmr.msra.gmra.mrb[0].mxu0 %v673_v51  ;;  %735 = vmatmul.mubr.bf16.vlgmr.msra.gmra.mrb[0].mxu1 %v677_v52 }
  0x39   : > { %730 = vmatprep.mubr.bf16.mxu0 %v674_v55  ;;  %738 = vmatprep.mubr.bf16.mxu1 %v678_v58 }
  0x40   : > { %731 = vmatmul.mubr.bf16.gmra.mrb[4].mxu0 %v675_v62  ;;  %739 = vmatmul.mubr.bf16.gmra.mrb[4].mxu1 %v679_v63 }
 0x10b   : > { %v728_v0 = vpop.f32.mrb[0].mxu0  ;;  %v736_v1 = vpop.f32.mrb[0].mxu1 }
 0x10c   : > { %465 = vst [vmem:[%s973_s30 + $0x10] sm:$0xff] %v728_v0  ;;  %473 = vst [vmem:[%s973_s30 + $0x50] sm:$0xff] %v736_v1  ;;  %v400_v2 = vpop.f32.mrb[1].mxu0  ;;  %v432_v3 = vpop.f32.mrb[1].mxu1 }
 0x10d   : > { %463 = vst [vmem:[%s973_s30] sm:$0xff] %v400_v2  ;;  %471 = vst [vmem:[%s973_s30 + $0x40] sm:$0xff] %v432_v3  ;;  %v729_v4 = vpop.f32.mrb[2].mxu0  ;;  %v737_v5 = vpop.f32.mrb[2].mxu1 }
 0x10e   : > { %466 = vst [vmem:[%s973_s30 + $0x18] sm:$0xff] %v729_v4  ;;  %474 = vst [vmem:[%s973_s30 + $0x58] sm:$0xff] %v737_v5  ;;  %v403_v6 = vpop.f32.mrb[3].mxu0  ;;  %v435_v7 = vpop.f32.mrb[3].mxu1 }
 0x10f   : > { %464 = vst [vmem:[%s973_s30 + $0x8] sm:$0xff] %v403_v6  ;;  %472 = vst [vmem:[%s973_s30 + $0x48] sm:$0xff] %v435_v7 }
 0x111   : > { %485 = sbr.rel (!%p925_p3) target bundleno = 289 (0x121), region = 32 }
 0x113   : > { %v732_v8 = vpop.f32.mrb[4].mxu0  ;;  %v740_v9 = vpop.f32.mrb[4].mxu1  ;;  %v552_v18 = vld [vmem:[%s973_s30 + $0x10] sm:$0xff] (%p925_p3) }
 0x114   : > { %469 = vst [vmem:[%s973_s30 + $0x30] sm:$0xff] %v732_v8  ;;  %477 = vst [vmem:[%s973_s30 + $0x70] sm:$0xff] %v740_v9  ;;  %v416_v10 = vpop.f32.mrb[5].mxu0  ;;  %v448_v11 = vpop.f32.mrb[5].mxu1  ;;  %v548_v16 = vld [vmem:[%s973_s30] sm:$0xff] (%p925_p3)  ;;  %v568_v26 = vld [vmem:[%s973_s30 + $0x50] sm:$0xff] (%p925_p3) }
 0x115   : > { %467 = vst [vmem:[%s973_s30 + $0x20] sm:$0xff] %v416_v10  ;;  %475 = vst [vmem:[%s973_s30 + $0x60] sm:$0xff] %v448_v11  ;;  %v733_v12 = vpop.f32.mrb[6].mxu0  ;;  %v741_v13 = vpop.f32.mrb[6].mxu1  ;;  %v554_v19 = vld [vmem:[%s973_s30 + $0x18] sm:$0xff] (%p925_p3)  ;;  %v564_v24 = vld [vmem:[%s973_s30 + $0x40] sm:$0xff] (%p925_p3) }
 0x116   : > { %470 = vst [vmem:[%s973_s30 + $0x38] sm:$0xff] %v733_v12  ;;  %478 = vst [vmem:[%s973_s30 + $0x78] sm:$0xff] %v741_v13  ;;  %v419_v14 = vpop.f32.mrb[7].mxu0  ;;  %v451_v15 = vpop.f32.mrb[7].mxu1  ;;  %v550_v17 = vld [vmem:[%s973_s30 + $0x8] sm:$0xff] (%p925_p3)  ;;  %v570_v27 = vld [vmem:[%s973_s30 + $0x58] sm:$0xff] (%p925_p3) }
 0x117   : > { %468 = vst [vmem:[%s973_s30 + $0x28] sm:$0xff] %v419_v14  ;;  %476 = vst [vmem:[%s973_s30 + $0x68] sm:$0xff] %v451_v15  ;;  %v566_v25 = vld [vmem:[%s973_s30 + $0x48] sm:$0xff] (%p925_p3) }
 0x118   : > { %549 = vst [vmem:[%s490_s6] sm:$0xff] %v548_v16  ;;  %551 = vst [vmem:[%s490_s6 + $0x20] sm:$0xff] %v550_v17 }
 0x119   : > { %553 = vst [vmem:[%s490_s6 + $0x40] sm:$0xff] %v552_v18  ;;  %555 = vst [vmem:[%s490_s6 + $0x60] sm:$0xff] %v554_v19 }
 0x11a   : > { %565 = vst [vmem:[%s490_s6 + $0x100] sm:$0xff] %v564_v24  ;;  %567 = vst [vmem:[%s490_s6 + $0x120] sm:$0xff] %v566_v25 }
 0x11b   : > { %v560_v22 = vld [vmem:[%s973_s30 + $0x30] sm:$0xff]  ;;  %569 = vst [vmem:[%s490_s6 + $0x140] sm:$0xff] %v568_v26  ;;  %571 = vst [vmem:[%s490_s6 + $0x160] sm:$0xff] %v570_v27 }
 0x11c   : > { %v556_v20 = vld [vmem:[%s973_s30 + $0x20] sm:$0xff]  ;;  %561 = vst [vmem:[%s490_s6 + $0xc0] sm:$0xff] %v560_v22  ;;  %v576_v30 = vld [vmem:[%s973_s30 + $0x70] sm:$0xff] }
 0x11d   : > { %557 = vst [vmem:[%s490_s6 + $0x80] sm:$0xff] %v556_v20  ;;  %v562_v23 = vld [vmem:[%s973_s30 + $0x38] sm:$0xff]  ;;  %v572_v28 = vld [vmem:[%s973_s30 + $0x60] sm:$0xff]  ;;  %577 = vst [vmem:[%s490_s6 + $0x1c0] sm:$0xff] %v576_v30 }
 0x11e   : > { %v558_v21 = vld [vmem:[%s973_s30 + $0x28] sm:$0xff]  ;;  %563 = vst [vmem:[%s490_s6 + $0xe0] sm:$0xff] %v562_v23  ;;  %573 = vst [vmem:[%s490_s6 + $0x180] sm:$0xff] %v572_v28  ;;  %v578_v31 = vld [vmem:[%s973_s30 + $0x78] sm:$0xff] }
 0x11f   : > { %559 = vst [vmem:[%s490_s6 + $0xa0] sm:$0xff] %v558_v21  ;;  %v574_v29 = vld [vmem:[%s973_s30 + $0x68] sm:$0xff]  ;;  %579 = vst [vmem:[%s490_s6 + $0x1e0] sm:$0xff] %v578_v31 }
 0x120   : > { %575 = vst [vmem:[%s490_s6 + $0x1a0] sm:$0xff] %v574_v29 }
 0x121 PF: > { %s12_s13 = sadd.s32 1, %s876_s13   ;;  %s1032_s9 = smov %s864_s10 }
 0x122   : > { %p9_p9 = scmp.ge.s32.totalorder %s12_s13, 6   ;;  %s1033_s10 = smov %s934_s19 }
 0x123   : > { %s1034_s11 = smov %s872_s12  ;;  %s1035_s12 = smov %s1037_s15 }
 0x124   :  { %11 = sbr.rel (!%p9_p9) target bundleno = 3 (0x3), region = 99 }

</bundles_post_ra>
